<compile_context>
chip_gen: v5e
topology: v5e:2x2
jax: 0.10.0
libtpu: 0.0.40
codegen_flags: <defaults>
</compile_context>

<pallas_src>
import jax
import jax.numpy as jnp
from jax.experimental import pallas as pl
from jax.experimental.pallas import tpu as pltpu

IN_CHANNELS = 32
OUT_CHANNELS = 16
KERNEL_SIZE = 4
STRIDE = 2
PADDING = 1
OUTPUT_PADDING = 1


def _round_up(v, m):
    return ((v + m - 1) // m) * m


def _tensorcores_per_chip():
    """Best-effort TensorCores-per-chip (megacore) detection; defaults to 1."""
    try:
        info = pltpu.get_tpu_info()
        for attr in ("num_cores", "core_count", "num_tensorcores",
                     "tensor_cores", "cores_per_chip"):
            v = getattr(info, attr, None)
            if isinstance(v, int) and v > 0:
                return v
    except Exception:
        pass
    try:
        kind = jax.devices()[0].device_kind.lower()
    except Exception:
        return 1
    # single-TensorCore chips
    if "lite" in kind or "v5e" in kind or "v6e" in kind or "v6 " in kind:
        return 1
    # megacore chips (2 TensorCores share the parallel grid axes)
    if any(t in kind for t in ("v2", "v3", "v4", "v5p", "v7", "7x")):
        return 2
    return 1


_NUM_TC = _tensorcores_per_chip()


def _make_kernel(bn):
    def kernel(a_ref, w_ref, b_ref, o_ref):
        # a_ref: (bn, 128, Lpad)  w_ref: (64, 128)  b_ref: (64, 1)  o_ref: (bn, 64, Lpad)
        w = w_ref[...]          # resident weights (hoisted out of the batch loop)
        bias = b_ref[...]       # fused (conv_bias - extra_bias), per output row
        for b in range(bn):     # static unroll over the images in this block
            acc = jnp.dot(w, a_ref[b], preferred_element_type=jnp.float32)
            o_ref[b] = jnp.tanh(acc + bias)   # tanh on the EUP, overlaps the MXU
    return kernel


def _gemm_bias_tanh(a_stacked, wt_mat, bias_col, *, bn):
    """tanh(wt_mat @ a_stacked[n] + bias) for every image n, lane-dense output."""
    n_pad, k, lpad = a_stacked.shape
    rows = wt_mat.shape[0]
    return pl.pallas_call(
        _make_kernel(bn),
        out_shape=jax.ShapeDtypeStruct((n_pad, rows, lpad), jnp.float32),
        grid_spec=pltpu.PrefetchScalarGridSpec(
            num_scalar_prefetch=0,
            grid=(n_pad // bn,),
            in_specs=[
                pl.BlockSpec((bn, k, lpad), lambda i: (i, 0, 0)),   # activation block
                pl.BlockSpec((rows, k), lambda i: (0, 0)),          # resident weights
                pl.BlockSpec((rows, 1), lambda i: (0, 0)),          # resident fused bias
            ],
            out_specs=pl.BlockSpec((bn, rows, lpad), lambda i: (i, 0, 0)),  # lane-dense
        ),
        compiler_params=pltpu.CompilerParams(
            dimension_semantics=("parallel",)),
    )(a_stacked, wt_mat, bias_col)


@jax.jit
def conv_transpose_tanh_sub(x, w_t, conv_bias, extra_bias):
    """Forward pass of ModelNew.

    x:          (N, C_in, H, W)  float32 (NCHW, matching PyTorch)
    w_t:        (C_in, C_out, 4, 4)  ConvTranspose2d weight
    conv_bias:  (C_out,)             ConvTranspose2d bias
    extra_bias: (C_out, 1, 1)        self.bias (subtracted before tanh)
    returns:    (N, C_out, 2H+1, 2W+1)
    """
    N, C_in, H, W = x.shape
    C_out = w_t.shape[1]
    SH, SW = H + 1, W + 1          # 2x2 output "super-pixels" per dim
    Wp = W + 2                     # padded row width
    L = SH * Wp                    # per-image lane extent (incl. junk column w'=W+1)
    Lpad = _round_up(L, 128)       # lane-dense (multiple of 128) GEMM width
    P = (H + 2) * Wp               # flat padded image length
    F = (Wp + 1) + Lpad            # flat width so every tap slice is in-bounds (F > P)

    # --- batch blocking: bn images per grid step; >=2 grid blocks only on megacore ---
    want_blocks = 2 if _NUM_TC >= 2 else 1
    bn = max(1, min(N, max(1, 2048 // Lpad), -(-N // want_blocks)))
    n_blocks = -(-N // bn)
    N_pad = n_blocks * bn

    # --- prologue: single pad, then 4 contiguous tap slices (NO transpose) ---
    xpad = jnp.pad(x.astype(jnp.float32),
                   ((0, N_pad - N), (0, 0), (1, 1), (1, 1)))        # (Np,Ci,H+2,W+2)
    xflat = jnp.pad(xpad.reshape(N_pad, C_in, P),
                    ((0, 0), (0, 0), (0, F - P)))                   # (Np,Ci,F)
    offs = tuple(d_h * Wp + d_w for d_h in range(2) for d_w in range(2))
    a_stacked = jnp.stack([xflat[:, :, o:o + Lpad] for o in offs], axis=1)
    a_stacked = a_stacked.reshape(N_pad, 4 * C_in, Lpad)            # rows = (dh,dw,ci)

    # --- W^T: rows (co, ph, pw), cols (dh, dw, ci); kh = ph + 2 - 2*dh ---
    ph = jnp.arange(2).reshape(2, 1, 1, 1)
    pw = jnp.arange(2).reshape(1, 2, 1, 1)
    dh = jnp.arange(2).reshape(1, 1, 2, 1)
    dw = jnp.arange(2).reshape(1, 1, 1, 2)
    kh = ph + 2 - 2 * dh
    kw = pw + 2 - 2 * dw
    w6 = w_t[:, :, kh, kw]                                          # (Ci,Co,ph,pw,dh,dw)
    wt_mat = jnp.transpose(w6, (1, 2, 3, 4, 5, 0)).reshape(C_out * 4, C_in * 4)
    wt_mat = wt_mat.astype(jnp.float32)

    # fused per-row bias: tanh(conv + conv_bias - extra_bias)
    bias_col = jnp.repeat(conv_bias - extra_bias.reshape(-1), 4).reshape(-1, 1)
    bias_col = bias_col.astype(jnp.float32)

    # --- hot path: Pallas GEMM + bias + tanh ---
    out_flat = _gemm_bias_tanh(a_stacked, wt_mat, bias_col, bn=bn)  # (Np, 64, Lpad)

    # --- depth-to-space straight into NCHW (drop lane pad, junk column, oh/ow = -1) ---
    o = out_flat[:N, :, :L].reshape(N, C_out, 2, 2, SH, Wp)[..., :SW]
    o = jnp.transpose(o, (0, 1, 4, 2, 5, 3)).reshape(N, C_out, 2 * SH, 2 * SW)
    return o[:, :, 1:, 1:]


@jax.jit
def _reference(x, w_t, conv_bias, extra_bias):
    """Pure-JAX reference (lax conv with lhs dilation == ConvTranspose2d)."""
    pad_lo = KERNEL_SIZE - 1 - PADDING
    pad_hi = KERNEL_SIZE - 1 - PADDING + OUTPUT_PADDING
    w_flip = jnp.transpose(w_t[:, :, ::-1, ::-1], (1, 0, 2, 3))  # (Co,Ci,KH,KW)
    y = jax.lax.conv_general_dilated(
        x, w_flip, window_strides=(1, 1),
        padding=((pad_lo, pad_hi), (pad_lo, pad_hi)),
        lhs_dilation=(STRIDE, STRIDE),
        dimension_numbers=("NCHW", "OIHW", "NCHW"))
    y = y + conv_bias.reshape(1, -1, 1, 1)
    return jnp.tanh(y - extra_bias.reshape(1, -1, 1, 1))


if __name__ == "__main__":
    key = jax.random.PRNGKey(0)
    k_x, k_w, k_cb, k_b = jax.random.split(key, 4)

    N, H, W = 2, 16, 16
    x = jax.random.normal(k_x, (N, IN_CHANNELS, H, W), dtype=jnp.float32)

    # ConvTranspose2d params (deterministic init, roughly PyTorch-scaled)
    fan_in = IN_CHANNELS * KERNEL_SIZE * KERNEL_SIZE
    bound = 1.0 / jnp.sqrt(fan_in)
    w_t = jax.random.uniform(k_w,
                             (IN_CHANNELS, OUT_CHANNELS, KERNEL_SIZE, KERNEL_SIZE),
                             minval=-bound, maxval=bound, dtype=jnp.float32)
    conv_bias = jax.random.uniform(k_cb, (OUT_CHANNELS,),
                                   minval=-bound, maxval=bound, dtype=jnp.float32)
    # extra bias: torch.randn(out_channels, 1, 1)
    extra_bias = jax.random.normal(k_b, (OUT_CHANNELS, 1, 1), dtype=jnp.float32)

    out = jax.block_until_ready(conv_transpose_tanh_sub(x, w_t, conv_bias, extra_bias))
    ref = jax.block_until_ready(_reference(x, w_t, conv_bias, extra_bias))
    assert out.shape == ref.shape == (N, OUT_CHANNELS, 2 * H + 1, 2 * W + 1)
    assert jnp.allclose(out, ref, atol=2e-5, rtol=2e-5), "mismatch vs reference"

    print("KERNEL_OK")
</pallas_src>

<mosaic_0001>
module attributes {stable_mosaic.version = 11 : i64} {
  func.func @kernel(%arg0: i32, %arg1: memref<2x128x384xf32, #tpu.memory_space<vmem>>, %arg2: memref<64x128xf32, #tpu.memory_space<vmem>>, %arg3: memref<64x1xf32, #tpu.memory_space<vmem>>, %arg4: memref<2x64x384xf32, #tpu.memory_space<vmem>>) attributes {dimension_semantics = [#tpu.dimension_semantics<parallel>], iteration_bounds = array<i64: 1>, scalar_prefetch = 0 : i64, scratch_operands = 0 : i64, tpu.core_type = #tpu.core_type<tc>, window_params = [{transform_indices = @transform_0, window_bounds = array<i64: 2, 128, 384>}, {pipeline_mode = #tpu.pipeline_mode<synchronous>, transform_indices = @transform_1, window_bounds = array<i64: 64, 128>}, {pipeline_mode = #tpu.pipeline_mode<synchronous>, transform_indices = @transform_2, window_bounds = array<i64: 64, 1>}, {transform_indices = @transform_3, window_bounds = array<i64: 2, 64, 384>}]} {
    %c0 = arith.constant 0 : index
    %c0_0 = arith.constant 0 : index
    %0 = vector.load %arg2[%c0, %c0_0] : memref<64x128xf32, #tpu.memory_space<vmem>>, vector<64x128xf32>
    %c0_1 = arith.constant 0 : index
    %c0_2 = arith.constant 0 : index
    %1 = vector.load %arg3[%c0_1, %c0_2] : memref<64x1xf32, #tpu.memory_space<vmem>>, vector<64x1xf32>
    %c0_3 = arith.constant 0 : index
    %c0_4 = arith.constant 0 : index
    %c0_5 = arith.constant 0 : index
    %2 = vector.load %arg1[%c0_3, %c0_4, %c0_5] : memref<2x128x384xf32, #tpu.memory_space<vmem>>, vector<1x128x384xf32>
    %3 = vector.shape_cast %2 : vector<1x128x384xf32> to vector<128x384xf32>
    %cst = arith.constant dense<0.000000e+00> : vector<64x384xf32>
    %4 = tpu.matmul %0, %3, %cst {dimension_numbers = #tpu.dot_dimension_numbers<[1], [0], [0], [1], [0, 0, 1, 1], [], []>} : vector<64x128xf32>, vector<128x384xf32>, vector<64x384xf32> -> vector<64x384xf32>
    %5 = vector.broadcast %1 : vector<64x1xf32> to vector<64x384xf32>
    %6 = arith.addf %4, %5 : vector<64x384xf32>
    %7 = math.tanh %6 : vector<64x384xf32>
    %c0_6 = arith.constant 0 : index
    %c0_7 = arith.constant 0 : index
    %c0_8 = arith.constant 0 : index
    %8 = vector.load %arg4[%c0_6, %c0_7, %c0_8] : memref<2x64x384xf32, #tpu.memory_space<vmem>>, vector<1x64x384xf32>
    %9 = vector.shape_cast %8 : vector<1x64x384xf32> to vector<64x384xf32>
    %10 = vector.shape_cast %7 : vector<64x384xf32> to vector<1x64x384xf32>
    tpu.vector_store %arg4[%c0_6, %c0_7, %c0_8], %10 {strides = array<i32>} : memref<2x64x384xf32, #tpu.memory_space<vmem>>, vector<1x64x384xf32>,
    %c1 = arith.constant 1 : index
    %c0_9 = arith.constant 0 : index
    %c0_10 = arith.constant 0 : index
    %11 = vector.load %arg1[%c1, %c0_9, %c0_10] : memref<2x128x384xf32, #tpu.memory_space<vmem>>, vector<1x128x384xf32>
    %12 = vector.shape_cast %11 : vector<1x128x384xf32> to vector<128x384xf32>
    %cst_11 = arith.constant dense<0.000000e+00> : vector<64x384xf32>
    %13 = tpu.matmul %0, %12, %cst_11 {dimension_numbers = #tpu.dot_dimension_numbers<[1], [0], [0], [1], [0, 0, 1, 1], [], []>} : vector<64x128xf32>, vector<128x384xf32>, vector<64x384xf32> -> vector<64x384xf32>
    %14 = vector.broadcast %1 : vector<64x1xf32> to vector<64x384xf32>
    %15 = arith.addf %13, %14 : vector<64x384xf32>
    %16 = math.tanh %15 : vector<64x384xf32>
    %c1_12 = arith.constant 1 : index
    %c0_13 = arith.constant 0 : index
    %c0_14 = arith.constant 0 : index
    %17 = vector.load %arg4[%c1_12, %c0_13, %c0_14] : memref<2x64x384xf32, #tpu.memory_space<vmem>>, vector<1x64x384xf32>
    %18 = vector.shape_cast %17 : vector<1x64x384xf32> to vector<64x384xf32>
    %19 = vector.shape_cast %16 : vector<64x384xf32> to vector<1x64x384xf32>
    tpu.vector_store %arg4[%c1_12, %c0_13, %c0_14], %19 {strides = array<i32>} : memref<2x64x384xf32, #tpu.memory_space<vmem>>, vector<1x64x384xf32>,
    return
  }
  func.func @transform_0(%arg0: i32) -> (i32, i32, i32) {
    %c0_i32 = arith.constant 0 : i32
    %c0_i32_0 = arith.constant 0 : i32
    %c0_i32_1 = arith.constant 0 : i32
    return %arg0, %c0_i32, %c0_i32_0 : i32, i32, i32
  }
  func.func @transform_1(%arg0: i32) -> (i32, i32) {
    %c0_i32 = arith.constant 0 : i32
    %c0_i32_0 = arith.constant 0 : i32
    %c0_i32_1 = arith.constant 0 : i32
    return %c0_i32, %c0_i32_0 : i32, i32
  }
  func.func @transform_2(%arg0: i32) -> (i32, i32) {
    %c0_i32 = arith.constant 0 : i32
    %c0_i32_0 = arith.constant 0 : i32
    %c0_i32_1 = arith.constant 0 : i32
    return %c0_i32, %c0_i32_0 : i32, i32
  }
  func.func @transform_3(%arg0: i32) -> (i32, i32, i32) {
    %c0_i32 = arith.constant 0 : i32
    %c0_i32_0 = arith.constant 0 : i32
    %c0_i32_1 = arith.constant 0 : i32
    return %arg0, %c0_i32, %c0_i32_0 : i32, i32, i32
  }
}

</mosaic_0001>

<bundles_post_ra>
// kernel: conv_transpose_tanh_sub.1
= control target key start
LH: loop header
LB: loop body
LE: loop exit
PB: predicated region body
PF: predicated region fallthrough
CT: control target
= control target key end

     0   :  { %s1350_s0 = inlined_call_operand.vmem [shape: f32[2,128,384], index: 0, kind: input, shape index: {}]   ;;  %s1351_s1 = inlined_call_operand.vmem [shape: f32[64,128], index: 1, kind: input, shape index: {}]   ;;  %s1352_s2 = inlined_call_operand.vmem [shape: f32[64,1], index: 2, kind: input, shape index: {}]   ;;  %s1353_s3 = inlined_call_operand.vmem [shape: f32[2,64,384], index: 3, kind: output, shape index: {}]  }
   0x1   :  { %v75_v0 = vld [vmem:[%s1350_s0 + $0x168] sm:$0xff]  ;;  %v76_v1 = vld [vmem:[%s1350_s0 + $0x170] sm:$0xff]  ;;  %v73_v3 = vld [vmem:[%s1350_s0 + $0x158] sm:$0xff] }
   0x2   :  { %v72_v2 = vld [vmem:[%s1350_s0 + $0x150] sm:$0xff]  ;;  %118 = vmatpush.msra.mxu0 %v75_v0  ;;  %586 = vmatpush.msra.mxu2 %v75_v0  ;;  %v69_v4 = vld [vmem:[%s1350_s0 + $0x138] sm:$0xff]  ;;  %v70_v5 = vld [vmem:[%s1350_s0 + $0x140] sm:$0xff] }
   0x3   :  { %159 = vmatpush.msra.mxu1 %v76_v1  ;;  %602 = vmatpush.msra.mxu3 %v76_v1  ;;  %v66_v6 = vld [vmem:[%s1350_s0 + $0x120] sm:$0xff]  ;;  %v67_v7 = vld [vmem:[%s1350_s0 + $0x128] sm:$0xff]  ;;  %v64_v9 = vld [vmem:[%s1350_s0 + $0x110] sm:$0xff] }
   0x4   :  { %119 = vmatpush.msra.mxu0 %v72_v2  ;;  %587 = vmatpush.msra.mxu2 %v72_v2  ;;  %v63_v8 = vld [vmem:[%s1350_s0 + $0x108] sm:$0xff]  ;;  %v60_v10 = vld [vmem:[%s1350_s0 + $0xf0] sm:$0xff]  ;;  %v61_v11 = vld [vmem:[%s1350_s0 + $0xf8] sm:$0xff] }
   0x5   :  { %160 = vmatpush.msra.mxu1 %v73_v3  ;;  %603 = vmatpush.msra.mxu3 %v73_v3  ;;  %v57_v12 = vld [vmem:[%s1350_s0 + $0xd8] sm:$0xff]  ;;  %v58_v13 = vld [vmem:[%s1350_s0 + $0xe0] sm:$0xff]  ;;  %v55_v15 = vld [vmem:[%s1350_s0 + $0xc8] sm:$0xff] }
   0x6   :  { %120 = vmatpush.msra.mxu0 %v69_v4  ;;  %588 = vmatpush.msra.mxu2 %v69_v4  ;;  %v54_v14 = vld [vmem:[%s1350_s0 + $0xc0] sm:$0xff]  ;;  %v51_v16 = vld [vmem:[%s1350_s0 + $0xa8] sm:$0xff]  ;;  %v52_v17 = vld [vmem:[%s1350_s0 + $0xb0] sm:$0xff] }
   0x7   :  { %161 = vmatpush.msra.mxu1 %v70_v5  ;;  %604 = vmatpush.msra.mxu3 %v70_v5  ;;  %v48_v18 = vld [vmem:[%s1350_s0 + $0x90] sm:$0xff]  ;;  %v49_v19 = vld [vmem:[%s1350_s0 + $0x98] sm:$0xff]  ;;  %v46_v21 = vld [vmem:[%s1350_s0 + $0x80] sm:$0xff] }
   0x8   :  { %121 = vmatpush.msra.mxu0 %v66_v6  ;;  %589 = vmatpush.msra.mxu2 %v66_v6  ;;  %v45_v20 = vld [vmem:[%s1350_s0 + $0x78] sm:$0xff]  ;;  %v42_v22 = vld [vmem:[%s1350_s0 + $0x60] sm:$0xff]  ;;  %v43_v23 = vld [vmem:[%s1350_s0 + $0x68] sm:$0xff] }
   0x9   :  { %162 = vmatpush.msra.mxu1 %v67_v7  ;;  %605 = vmatpush.msra.mxu3 %v67_v7  ;;  %v39_v24 = vld [vmem:[%s1350_s0 + $0x48] sm:$0xff]  ;;  %v40_v25 = vld [vmem:[%s1350_s0 + $0x50] sm:$0xff]  ;;  %v37_v27 = vld [vmem:[%s1350_s0 + $0x38] sm:$0xff]  ;;  %v718_v7 = vmov 0  }
   0xa   :  { %122 = vmatpush.msra.mxu0 %v63_v8  ;;  %590 = vmatpush.msra.mxu2 %v63_v8  ;;  %v36_v26 = vld [vmem:[%s1350_s0 + $0x30] sm:$0xff]  ;;  %v33_v28 = vld [vmem:[%s1350_s0 + $0x18] sm:$0xff]  ;;  %v34_v29 = vld [vmem:[%s1350_s0 + $0x20] sm:$0xff] }
   0xb   :  { %163 = vmatpush.msra.mxu1 %v64_v9  ;;  %606 = vmatpush.msra.mxu3 %v64_v9  ;;  %v30_v30 = vld [vmem:[%s1350_s0] sm:$0xff]  ;;  %v31_v31 = vld [vmem:[%s1350_s0 + $0x8] sm:$0xff]  ;;  %v77_v34 = vld [vmem:[%s1350_s0 + $0x178] sm:$0xff] }
   0xc   :  { %123 = vmatpush.msra.mxu0 %v60_v10  ;;  %591 = vmatpush.msra.mxu2 %v60_v10  ;;  %v838_v32 = vld [vmem:[%s1351_s1] sm:$0xff]  ;;  %v559_v35 = vld [vmem:[%s1350_s0 + $0x2e8] sm:$0xff]  ;;  %v560_v36 = vld [vmem:[%s1350_s0 + $0x2f0] sm:$0xff] }
   0xd   :  { %164 = vmatpush.msra.mxu1 %v61_v11  ;;  %607 = vmatpush.msra.mxu3 %v61_v11  ;;  %v843_v33 = vld [vmem:[%s1351_s1 + $0x20] sm:$0xff]  ;;  %v561_v37 = vld [vmem:[%s1350_s0 + $0x2f8] sm:$0xff]  ;;  %v556_v39 = vld [vmem:[%s1350_s0 + $0x2d0] sm:$0xff] }
   0xe   :  { %124 = vmatpush.msra.mxu0 %v57_v12  ;;  %592 = vmatpush.msra.mxu2 %v57_v12  ;;  %v74_v38 = vld [vmem:[%s1350_s0 + $0x160] sm:$0xff]  ;;  %v557_v40 = vld [vmem:[%s1350_s0 + $0x2d8] sm:$0xff]  ;;  %v71_v42 = vld [vmem:[%s1350_s0 + $0x148] sm:$0xff] }
   0xf   :  { %165 = vmatpush.msra.mxu1 %v58_v13  ;;  %608 = vmatpush.msra.mxu3 %v58_v13  ;;  %v558_v41 = vld [vmem:[%s1350_s0 + $0x2e0] sm:$0xff]  ;;  %v553_v43 = vld [vmem:[%s1350_s0 + $0x2b8] sm:$0xff]  ;;  %v555_v45 = vld [vmem:[%s1350_s0 + $0x2c8] sm:$0xff] }
  0x10   :  { %125 = vmatpush.msra.mxu0 %v54_v14  ;;  %593 = vmatpush.msra.mxu2 %v54_v14  ;;  %v554_v44 = vld [vmem:[%s1350_s0 + $0x2c0] sm:$0xff]  ;;  %v68_v46 = vld [vmem:[%s1350_s0 + $0x130] sm:$0xff]  ;;  %v551_v48 = vld [vmem:[%s1350_s0 + $0x2a8] sm:$0xff] }
  0x11   :  { %166 = vmatpush.msra.mxu1 %v55_v15  ;;  %609 = vmatpush.msra.mxu3 %v55_v15  ;;  %v550_v47 = vld [vmem:[%s1350_s0 + $0x2a0] sm:$0xff]  ;;  %v552_v49 = vld [vmem:[%s1350_s0 + $0x2b0] sm:$0xff]  ;;  %v900_v50 = vld [vmem:[%s1351_s1 + $0x8] sm:$0xff] }
  0x12   :  { %126 = vmatpush.msra.mxu0 %v51_v16  ;;  %594 = vmatpush.msra.mxu2 %v51_v16  ;;  %v905_v51 = vld [vmem:[%s1351_s1 + $0x28] sm:$0xff]  ;;  %v65_v52 = vld [vmem:[%s1350_s0 + $0x118] sm:$0xff]  ;;  %v548_v54 = vld [vmem:[%s1350_s0 + $0x290] sm:$0xff] }
  0x13   :  { %167 = vmatpush.msra.mxu1 %v52_v17  ;;  %610 = vmatpush.msra.mxu3 %v52_v17  ;;  %v547_v53 = vld [vmem:[%s1350_s0 + $0x288] sm:$0xff]  ;;  %v549_v55 = vld [vmem:[%s1350_s0 + $0x298] sm:$0xff]  ;;  %v62_v56 = vld [vmem:[%s1350_s0 + $0x100] sm:$0xff] }
  0x14   :  { %127 = vmatpush.msra.mxu0 %v48_v18  ;;  %595 = vmatpush.msra.mxu2 %v48_v18  ;;  %v544_v57 = vld [vmem:[%s1350_s0 + $0x270] sm:$0xff]  ;;  %v545_v58 = vld [vmem:[%s1350_s0 + $0x278] sm:$0xff]  ;;  %v546_v59 = vld [vmem:[%s1350_s0 + $0x280] sm:$0xff] }
  0x15   :  { %168 = vmatpush.msra.mxu1 %v49_v19  ;;  %611 = vmatpush.msra.mxu3 %v49_v19  ;;  %v59_v60 = vld [vmem:[%s1350_s0 + $0xe8] sm:$0xff]  ;;  %v541_v61 = vld [vmem:[%s1350_s0 + $0x258] sm:$0xff]  ;;  %v542_v62 = vld [vmem:[%s1350_s0 + $0x260] sm:$0xff] }
  0x16   :  { %128 = vmatpush.msra.mxu0 %v45_v20  ;;  %596 = vmatpush.msra.mxu2 %v45_v20  ;;  %v543_v63 = vld [vmem:[%s1350_s0 + $0x268] sm:$0xff]  ;;  %v56_v0 = vld [vmem:[%s1350_s0 + $0xd0] sm:$0xff]  ;;  %v538_v1 = vld [vmem:[%s1350_s0 + $0x240] sm:$0xff] }
  0x17   :  { %169 = vmatpush.msra.mxu1 %v46_v21  ;;  %612 = vmatpush.msra.mxu3 %v46_v21  ;;  %v539_v2 = vld [vmem:[%s1350_s0 + $0x248] sm:$0xff]  ;;  %v540_v3 = vld [vmem:[%s1350_s0 + $0x250] sm:$0xff]  ;;  %v53_v6 = vld [vmem:[%s1350_s0 + $0xb8] sm:$0xff] }
  0x18   :  { %129 = vmatpush.msra.mxu0 %v42_v22  ;;  %597 = vmatpush.msra.mxu2 %v42_v22  ;;  %v962_v4 = vld [vmem:[%s1351_s1 + $0x10] sm:$0xff]  ;;  %v535_v8 = vld [vmem:[%s1350_s0 + $0x228] sm:$0xff]  ;;  %v22_v9 = vld [vmem:[%s1352_s2] sm:$0xff] }
  0x19   :  { %170 = vmatpush.msra.mxu1 %v43_v23  ;;  %613 = vmatpush.msra.mxu3 %v43_v23  ;;  %v967_v5 = vld [vmem:[%s1351_s1 + $0x30] sm:$0xff]  ;;  %v537_v11 = vld [vmem:[%s1350_s0 + $0x238] sm:$0xff]  ;;  %v50_v12 = vld [vmem:[%s1350_s0 + $0xa0] sm:$0xff] }
  0x1a   :  { %130 = vmatpush.msra.mxu0 %v39_v24  ;;  %598 = vmatpush.msra.mxu2 %v39_v24  ;;  %v536_v10 = vld [vmem:[%s1350_s0 + $0x230] sm:$0xff]  ;;  %v533_v14 = vld [vmem:[%s1350_s0 + $0x218] sm:$0xff]  ;;  %v534_v15 = vld [vmem:[%s1350_s0 + $0x220] sm:$0xff] }
  0x1b   :  { %171 = vmatpush.msra.mxu1 %v40_v25  ;;  %614 = vmatpush.msra.mxu3 %v40_v25  ;;  %v532_v13 = vld [vmem:[%s1350_s0 + $0x210] sm:$0xff]  ;;  %v47_v16 = vld [vmem:[%s1350_s0 + $0x88] sm:$0xff]  ;;  %v529_v17 = vld [vmem:[%s1350_s0 + $0x1f8] sm:$0xff] }
  0x1c   :  { %131 = vmatpush.msra.mxu0 %v36_v26  ;;  %599 = vmatpush.msra.mxu2 %v36_v26  ;;  %v530_v18 = vld [vmem:[%s1350_s0 + $0x200] sm:$0xff]  ;;  %v531_v19 = vld [vmem:[%s1350_s0 + $0x208] sm:$0xff]  ;;  %v44_v20 = vld [vmem:[%s1350_s0 + $0x70] sm:$0xff] }
  0x1d   :  { %172 = vmatpush.msra.mxu1 %v37_v27  ;;  %615 = vmatpush.msra.mxu3 %v37_v27  ;;  %v526_v21 = vld [vmem:[%s1350_s0 + $0x1e0] sm:$0xff]  ;;  %v527_v22 = vld [vmem:[%s1350_s0 + $0x1e8] sm:$0xff]  ;;  %v528_v23 = vld [vmem:[%s1350_s0 + $0x1f0] sm:$0xff] }
  0x1e   :  { %132 = vmatpush.msra.mxu0 %v33_v28  ;;  %600 = vmatpush.msra.mxu2 %v33_v28  ;;  %v1028_v24 = vld [vmem:[%s1351_s1 + $0x18] sm:$0xff]  ;;  %v523_v27 = vld [vmem:[%s1350_s0 + $0x1c8] sm:$0xff]  ;;  %v24_v28 = vld [vmem:[%s1352_s2 + $0x10] sm:$0xff] }
  0x1f   :  { %173 = vmatpush.msra.mxu1 %v34_v29  ;;  %616 = vmatpush.msra.mxu3 %v34_v29  ;;  %v1033_v25 = vld [vmem:[%s1351_s1 + $0x38] sm:$0xff]  ;;  %v23_v29 = vld [vmem:[%s1352_s2 + $0x8] sm:$0xff] }
  0x20   :  { %133 = vmatpush.msra.mxu0 %v30_v30  ;;  %601 = vmatpush.msra.mxu2 %v30_v30  ;;  %v41_v26 = vld [vmem:[%s1350_s0 + $0x58] sm:$0xff]  ;;  %v524_v30 = vld [vmem:[%s1350_s0 + $0x1d0] sm:$0xff] }
  0x21   :  { %174 = vmatpush.msra.mxu1 %v31_v31  ;;  %617 = vmatpush.msra.mxu3 %v31_v31  ;;  %v525_v31 = vld [vmem:[%s1350_s0 + $0x1d8] sm:$0xff] }
  0x22   :  { %134 = vmatmul.f32.vlgmr.msra.gmra.mxu0 %v838_v32  ;;  %146 = vmatmul.f32.vlgmr.msra.gmra.mxu2 %v843_v33 }
  0x23   :  { %175 = vmatmul.f32.vlgmr.msra.gmra.mxu1 %v838_v32  ;;  %187 = vmatmul.f32.vlgmr.msra.gmra.mxu3 %v843_v33 }
  0x24   :  { %200 = vmatpush.msrb.mxu2 %v77_v34  ;;  %338 = vmatpush.msrb.mxu3 %v559_v35  ;;  %v38_v34 = vld [vmem:[%s1350_s0 + $0x40] sm:$0xff]  ;;  %v520_v35 = vld [vmem:[%s1350_s0 + $0x1b0] sm:$0xff] }
  0x25   :  { %379 = vmatpush.msrb.mxu0 %v560_v36  ;;  %420 = vmatpush.msrb.mxu1 %v561_v37  ;;  %v521_v36 = vld [vmem:[%s1350_s0 + $0x1b8] sm:$0xff]  ;;  %v522_v37 = vld [vmem:[%s1350_s0 + $0x1c0] sm:$0xff] }
  0x26   :  { %201 = vmatpush.msrb.mxu2 %v74_v38  ;;  %339 = vmatpush.msrb.mxu3 %v556_v39  ;;  %v35_v38 = vld [vmem:[%s1350_s0 + $0x28] sm:$0xff]  ;;  %v517_v39 = vld [vmem:[%s1350_s0 + $0x198] sm:$0xff] }
  0x27   :  { %380 = vmatpush.msrb.mxu0 %v557_v40  ;;  %421 = vmatpush.msrb.mxu1 %v558_v41  ;;  %v518_v40 = vld [vmem:[%s1350_s0 + $0x1a0] sm:$0xff]  ;;  %v519_v41 = vld [vmem:[%s1350_s0 + $0x1a8] sm:$0xff] }
  0x28   :  { %202 = vmatpush.msrb.mxu2 %v71_v42  ;;  %340 = vmatpush.msrb.mxu3 %v553_v43  ;;  %v32_v42 = vld [vmem:[%s1350_s0 + $0x10] sm:$0xff]  ;;  %v514_v43 = vld [vmem:[%s1350_s0 + $0x180] sm:$0xff] }
  0x29   :  { %381 = vmatpush.msrb.mxu0 %v554_v44  ;;  %422 = vmatpush.msrb.mxu1 %v555_v45  ;;  %v515_v44 = vld [vmem:[%s1350_s0 + $0x188] sm:$0xff]  ;;  %v516_v45 = vld [vmem:[%s1350_s0 + $0x190] sm:$0xff] }
  0x2a   :  { %203 = vmatpush.msrb.mxu2 %v68_v46  ;;  %341 = vmatpush.msrb.mxu3 %v550_v47  ;;  %v25_v46 = vld [vmem:[%s1352_s2 + $0x18] sm:$0xff]  ;;  %v28_v47 = vld [vmem:[%s1352_s2 + $0x30] sm:$0xff] }
  0x2b   :  { %382 = vmatpush.msrb.mxu0 %v551_v48  ;;  %423 = vmatpush.msrb.mxu1 %v552_v49  ;;  %v26_v48 = vld [vmem:[%s1352_s2 + $0x20] sm:$0xff]  ;;  %v29_v49 = vld [vmem:[%s1352_s2 + $0x38] sm:$0xff] }
  0x2c   :  { %137 = vmatmul.f32.gmra.mxu0 %v900_v50  ;;  %149 = vmatmul.f32.gmra.mxu2 %v905_v51 }
  0x2d   :  { %178 = vmatmul.f32.gmra.mxu1 %v900_v50  ;;  %190 = vmatmul.f32.gmra.mxu3 %v905_v51 }
  0x2e   :  { %204 = vmatpush.msrb.mxu2 %v65_v52  ;;  %342 = vmatpush.msrb.mxu3 %v547_v53  ;;  %v27_v52 = vld [vmem:[%s1352_s2 + $0x28] sm:$0xff] }
  0x2f   :  { %383 = vmatpush.msrb.mxu0 %v548_v54  ;;  %424 = vmatpush.msrb.mxu1 %v549_v55 }
  0x30   :  { %205 = vmatpush.msrb.mxu2 %v62_v56  ;;  %343 = vmatpush.msrb.mxu3 %v544_v57 }
  0x31   :  { %384 = vmatpush.msrb.mxu0 %v545_v58  ;;  %425 = vmatpush.msrb.mxu1 %v546_v59 }
  0x32   :  { %206 = vmatpush.msrb.mxu2 %v59_v60  ;;  %344 = vmatpush.msrb.mxu3 %v541_v61 }
  0x33   :  { %385 = vmatpush.msrb.mxu0 %v542_v62  ;;  %426 = vmatpush.msrb.mxu1 %v543_v63 }
  0x34   :  { %207 = vmatpush.msrb.mxu2 %v56_v0  ;;  %345 = vmatpush.msrb.mxu3 %v538_v1 }
  0x35   :  { %386 = vmatpush.msrb.mxu0 %v539_v2  ;;  %427 = vmatpush.msrb.mxu1 %v540_v3 }
  0x36   :  { %619 = vset.pattern.permute.xlu0 %v718_v7  ;;  %140 = vmatmul.f32.gmra.mxu0 %v962_v4 }
  0x37   :  { %152 = vmatmul.f32.gmra.mxu2 %v967_v5  ;;  %181 = vmatmul.f32.gmra.mxu1 %v962_v4 }
  0x38   :  { %193 = vmatmul.f32.gmra.mxu3 %v967_v5  ;;  %208 = vmatpush.msrb.mxu2 %v53_v6 }
  0x39   :  { %346 = vmatpush.msrb.mxu3 %v535_v8  ;;  %80 = vperm.xlu0 %619, %v22_v9  }
  0x3a   :  { %387 = vmatpush.msrb.mxu0 %v536_v10  ;;  %428 = vmatpush.msrb.mxu1 %v537_v11 }
  0x3b   :  { %209 = vmatpush.msrb.mxu2 %v50_v12  ;;  %347 = vmatpush.msrb.mxu3 %v532_v13 }
  0x3c   :  { %388 = vmatpush.msrb.mxu0 %v533_v14  ;;  %429 = vmatpush.msrb.mxu1 %v534_v15 }
  0x3d   :  { %210 = vmatpush.msrb.mxu2 %v47_v16  ;;  %348 = vmatpush.msrb.mxu3 %v529_v17 }
  0x3e   :  { %389 = vmatpush.msrb.mxu0 %v530_v18  ;;  %430 = vmatpush.msrb.mxu1 %v531_v19 }
  0x3f   :  { %211 = vmatpush.msrb.mxu2 %v44_v20  ;;  %349 = vmatpush.msrb.mxu3 %v526_v21 }
  0x40   :  { %390 = vmatpush.msrb.mxu0 %v527_v22  ;;  %431 = vmatpush.msrb.mxu1 %v528_v23 }
  0x41   :  { %620 = vset.pattern.permute.xlu1 %v718_v7  ;;  %143 = vmatmul.f32.gmra.mxu0 %v1028_v24 }
  0x42   :  { %155 = vmatmul.f32.gmra.mxu2 %v1033_v25  ;;  %184 = vmatmul.f32.gmra.mxu1 %v1028_v24 }
  0x43   :  { %196 = vmatmul.f32.gmra.mxu3 %v1033_v25  ;;  %212 = vmatpush.msrb.mxu2 %v41_v26 }
  0x44   :  { %350 = vmatpush.msrb.mxu3 %v523_v27  ;;  %90 = vperm.xlu1 %620, %v24_v28  }
  0x45   :  { %85 = vperm.xlu0 %619, %v23_v29   ;;  %391 = vmatpush.msrb.mxu0 %v524_v30 }
  0x46   :  { %432 = vmatpush.msrb.mxu1 %v525_v31  ;;  %213 = vmatpush.msrb.mxu2 %v38_v34 }
  0x47   :  { %351 = vmatpush.msrb.mxu3 %v520_v35  ;;  %392 = vmatpush.msrb.mxu0 %v521_v36 }
  0x48   :  { %433 = vmatpush.msrb.mxu1 %v522_v37  ;;  %214 = vmatpush.msrb.mxu2 %v35_v38 }
  0x49   :  { %352 = vmatpush.msrb.mxu3 %v517_v39  ;;  %393 = vmatpush.msrb.mxu0 %v518_v40 }
  0x4a   :  { %434 = vmatpush.msrb.mxu1 %v519_v41  ;;  %215 = vmatpush.msrb.mxu2 %v32_v42 }
  0x4b   :  { %353 = vmatpush.msrb.mxu3 %v514_v43  ;;  %394 = vmatpush.msrb.mxu0 %v515_v44 }
  0x4c   :  { %435 = vmatpush.msrb.mxu1 %v516_v45  ;;  %216 = vmatmul.f32.vlgmr.msrb.gmra.mxu2 %v838_v32 }
  0x4d   :  { %354 = vmatmul.f32.vlgmr.msrb.gmra.mxu3 %v838_v32  ;;  %395 = vmatmul.f32.vlgmr.msrb.gmra.mxu0 %v838_v32 }
  0x4e   :  { %436 = vmatmul.f32.vlgmr.msrb.gmra.mxu1 %v838_v32  ;;  %95 = vperm.xlu1 %620, %v25_v46  }
  0x4f   :  { %110 = vperm.xlu0 %619, %v28_v47   ;;  %621 = vset.pattern.permute.xlu2 %v718_v7 }
  0x50   :  { %100 = vperm.xlu2 %621, %v26_v48  }
  0x54   :  { %219 = vmatmul.f32.gmra.mxu2 %v900_v50 }
  0x55   :  { %357 = vmatmul.f32.gmra.mxu3 %v900_v50  ;;  %398 = vmatmul.f32.gmra.mxu0 %v900_v50 }
  0x56   :  { %439 = vmatmul.f32.gmra.mxu1 %v900_v50  ;;  %115 = vperm.xlu1 %620, %v29_v49  }
  0x58   :  { %105 = vperm.xlu2 %621, %v27_v52  }
  0x5c   :  { %222 = vmatmul.f32.gmra.mxu2 %v962_v4 }
  0x5d   :  { %360 = vmatmul.f32.gmra.mxu3 %v962_v4  ;;  %401 = vmatmul.f32.gmra.mxu0 %v962_v4 }
  0x5e   :  { %442 = vmatmul.f32.gmra.mxu1 %v962_v4 }
  0x64   :  { %225 = vmatmul.f32.gmra.mxu2 %v1028_v24 }
  0x65   :  { %363 = vmatmul.f32.gmra.mxu3 %v1028_v24  ;;  %404 = vmatmul.f32.gmra.mxu0 %v1028_v24 }
  0x66   :  { %445 = vmatmul.f32.gmra.mxu1 %v1028_v24 }
  0x6c   :  { %228 = vmatmul.f32.gmra.mxu2 %v843_v33 }
  0x6d   :  { %366 = vmatmul.f32.gmra.mxu3 %v843_v33  ;;  %407 = vmatmul.f32.gmra.mxu0 %v843_v33 }
  0x6e   :  { %448 = vmatmul.f32.gmra.mxu1 %v843_v33 }
  0x74   :  { %231 = vmatmul.f32.gmra.mxu2 %v905_v51 }
  0x75   :  { %369 = vmatmul.f32.gmra.mxu3 %v905_v51  ;;  %410 = vmatmul.f32.gmra.mxu0 %v905_v51 }
  0x76   :  { %451 = vmatmul.f32.gmra.mxu1 %v905_v51 }
  0x7c   :  { %234 = vmatmul.f32.gmra.mxu2 %v967_v5 }
  0x7d   :  { %372 = vmatmul.f32.gmra.mxu3 %v967_v5  ;;  %413 = vmatmul.f32.gmra.mxu0 %v967_v5 }
  0x7e   :  { %454 = vmatmul.f32.gmra.mxu1 %v967_v5 }
  0x84   :  { %237 = vmatmul.f32.gmra.mxu2 %v1033_v25 }
  0x85   :  { %375 = vmatmul.f32.gmra.mxu3 %v1033_v25  ;;  %416 = vmatmul.f32.gmra.mxu0 %v1033_v25 }
  0x86   :  { %457 = vmatmul.f32.gmra.mxu1 %v1033_v25 }
  0x9f   :  { %v135_v32 = vpop.f32.mrf.mxu0 }
  0xa0   :  { %v176_v33 = vpop.f32.mrf.mxu1 }
  0xa5   :  { %v147_v50 = vpop.f32.mrf.mxu2 }
  0xa6   :  { %v188_v51 = vpop.f32.mrf.mxu3 }
  0xa9   :  { %v138_v59 = vpop.f32.mrf.mxu0 }
  0xaa   :  { %v1142_v53 = vpop.permute.xlu2 %100  ;;  %v179_v60 = vpop.f32.mrf.mxu1 }
  0xab   :  { %v1144_v54 = vpop.permute.xlu0 %80  ;;  %v148_v55 = vadd.f32 %v147_v50, %v1142_v53  ;;  %v189_v58 = vadd.f32 %v188_v51, %v1142_v53 }
  0xac   :  { %v136_v56 = vadd.f32 %v135_v32, %v1144_v54  ;;  %v177_v57 = vadd.f32 %v176_v33, %v1144_v54 }
  0xad   :  { %622 = vtanh.f32 %v148_v55 }
  0xae   :  { %624 = vtanh.f32 %v136_v56 }
  0xaf   :  { %626 = vtanh.f32 %v177_v57  ;;  %v150_v61 = vpop.f32.mrf.mxu2 }
  0xb0   :  { %628 = vtanh.f32 %v189_v58  ;;  %v191_v62 = vpop.f32.mrf.mxu3 }
  0xb2   :  { %v1150_v63 = vpop.permute.xlu2 %105 }
  0xb3   :  { %v623_v0 = vpop.eup %622  ;;  %v151_v1 = vadd.f32 %v150_v61, %v1150_v63  ;;  %v192_v2 = vadd.f32 %v191_v62, %v1150_v63  ;;  %v141_v7 = vpop.f32.mrf.mxu0 }
  0xb4   :  { %v625_v3 = vpop.eup %624  ;;  %277 = vst [vmem:[%s1353_s3 + $0x60] sm:$0xff] %v623_v0  ;;  %v182_v10 = vpop.f32.mrf.mxu1 }
  0xb5   :  { %v627_v4 = vpop.eup %626  ;;  %265 = vst [vmem:[%s1353_s3] sm:$0xff] %v625_v3  ;;  %630 = vtanh.f32 %v151_v1 }
  0xb6   :  { %v629_v5 = vpop.eup %628  ;;  %266 = vst [vmem:[%s1353_s3 + $0x8] sm:$0xff] %v627_v4  ;;  %v1163_v6 = vpop.permute.xlu1 %90  ;;  %632 = vtanh.f32 %v192_v2 }
  0xb7   :  { %278 = vst [vmem:[%s1353_s3 + $0x68] sm:$0xff] %v629_v5  ;;  %v1168_v8 = vpop.permute.xlu0 %85  ;;  %v142_v9 = vadd.f32 %v141_v7, %v1163_v6  ;;  %v183_v13 = vadd.f32 %v182_v10, %v1163_v6 }
  0xb8   :  { %v139_v11 = vadd.f32 %v138_v59, %v1168_v8  ;;  %v180_v12 = vadd.f32 %v179_v60, %v1168_v8 }
  0xb9   :  { %634 = vtanh.f32 %v142_v9 }
  0xba   :  { %636 = vtanh.f32 %v139_v11  ;;  %v153_v15 = vpop.f32.mrf.mxu2 }
  0xbb   :  { %v631_v14 = vpop.eup %630  ;;  %638 = vtanh.f32 %v180_v12  ;;  %v194_v17 = vpop.f32.mrf.mxu3 }
  0xbc   :  { %v633_v16 = vpop.eup %632  ;;  %280 = vst [vmem:[%s1353_s3 + $0x78] sm:$0xff] %v631_v14  ;;  %640 = vtanh.f32 %v183_v13 }
  0xbd   :  { %281 = vst [vmem:[%s1353_s3 + $0x80] sm:$0xff] %v633_v16 }
  0xbe   :  { %v144_v21 = vpop.f32.mrf.mxu0 }
  0xbf   :  { %v635_v18 = vpop.eup %634  ;;  %v185_v25 = vpop.f32.mrf.mxu1 }
  0xc0   :  { %v637_v19 = vpop.eup %636  ;;  %271 = vst [vmem:[%s1353_s3 + $0x30] sm:$0xff] %v635_v18  ;;  %v1183_v20 = vpop.permute.xlu1 %95 }
  0xc1   :  { %v639_v22 = vpop.eup %638  ;;  %268 = vst [vmem:[%s1353_s3 + $0x18] sm:$0xff] %v637_v19  ;;  %v1188_v23 = vpop.permute.xlu0 %110  ;;  %v145_v24 = vadd.f32 %v144_v21, %v1183_v20  ;;  %v186_v29 = vadd.f32 %v185_v25, %v1183_v20 }
  0xc2   :  { %v641_v26 = vpop.eup %640  ;;  %269 = vst [vmem:[%s1353_s3 + $0x20] sm:$0xff] %v639_v22  ;;  %v154_v27 = vadd.f32 %v153_v15, %v1188_v23  ;;  %v195_v28 = vadd.f32 %v194_v17, %v1188_v23 }
  0xc3   :  { %272 = vst [vmem:[%s1353_s3 + $0x38] sm:$0xff] %v641_v26  ;;  %642 = vtanh.f32 %v145_v24 }
  0xc4   :  { %644 = vtanh.f32 %v154_v27 }
  0xc5   :  { %646 = vtanh.f32 %v195_v28  ;;  %v156_v30 = vpop.f32.mrf.mxu2 }
  0xc6   :  { %648 = vtanh.f32 %v186_v29  ;;  %v197_v31 = vpop.f32.mrf.mxu3 }
  0xc8   :  { %v1200_v34 = vpop.permute.xlu1 %115 }
  0xc9   :  { %v643_v35 = vpop.eup %642  ;;  %v157_v36 = vadd.f32 %v156_v30, %v1200_v34  ;;  %v198_v37 = vadd.f32 %v197_v31, %v1200_v34 }
  0xca   :  { %v645_v38 = vpop.eup %644  ;;  %274 = vst [vmem:[%s1353_s3 + $0x48] sm:$0xff] %v643_v35  ;;  %v396_v39 = vpop.f32.mrf.mxu0 }
  0xcb   :  { %v647_v40 = vpop.eup %646  ;;  %283 = vst [vmem:[%s1353_s3 + $0x90] sm:$0xff] %v645_v38  ;;  %650 = vtanh.f32 %v157_v36  ;;  %v397_v41 = vadd.f32 %v396_v39, %v1144_v54  ;;  %v437_v42 = vpop.f32.mrf.mxu1 }
  0xcc   :  { %v649_v43 = vpop.eup %648  ;;  %284 = vst [vmem:[%s1353_s3 + $0x98] sm:$0xff] %v647_v40  ;;  %652 = vtanh.f32 %v198_v37  ;;  %v438_v44 = vadd.f32 %v437_v42, %v1144_v54 }
  0xcd   :  { %275 = vst [vmem:[%s1353_s3 + $0x50] sm:$0xff] %v649_v43  ;;  %654 = vtanh.f32 %v397_v41 }
  0xce   :  { %656 = vtanh.f32 %v438_v44 }
  0xcf   :  { %v217_v45 = vpop.f32.mrf.mxu2 }
  0xd0   :  { %v218_v46 = vadd.f32 %v217_v45, %v1144_v54  ;;  %v355_v47 = vpop.f32.mrf.mxu3 }
  0xd1   :  { %v651_v48 = vpop.eup %650  ;;  %v356_v49 = vadd.f32 %v355_v47, %v1144_v54 }
  0xd2   :  { %v653_v52 = vpop.eup %652  ;;  %286 = vst [vmem:[%s1353_s3 + $0xa8] sm:$0xff] %v651_v48  ;;  %658 = vtanh.f32 %v218_v46  ;;  %v399_v32 = vpop.f32.mrf.mxu0 }
  0xd3   :  { %v655_v33 = vpop.eup %654  ;;  %287 = vst [vmem:[%s1353_s3 + $0xb0] sm:$0xff] %v653_v52  ;;  %660 = vtanh.f32 %v356_v49  ;;  %v400_v50 = vadd.f32 %v399_v32, %v1168_v8  ;;  %v440_v51 = vpop.f32.mrf.mxu1 }
  0xd4   :  { %v657_v55 = vpop.eup %656  ;;  %563 = vst [vmem:[%s1353_s3 + $0xc8] sm:$0xff] %v655_v33  ;;  %v441_v54 = vadd.f32 %v440_v51, %v1168_v8 }
  0xd5   :  { %564 = vst [vmem:[%s1353_s3 + $0xd0] sm:$0xff] %v657_v55  ;;  %662 = vtanh.f32 %v400_v50 }
  0xd6   :  { %664 = vtanh.f32 %v441_v54 }
  0xd7   :  { %v220_v56 = vpop.f32.mrf.mxu2 }
  0xd8   :  { %v659_v57 = vpop.eup %658  ;;  %v221_v58 = vadd.f32 %v220_v56, %v1168_v8  ;;  %v358_v59 = vpop.f32.mrf.mxu3 }
  0xd9   :  { %v661_v60 = vpop.eup %660  ;;  %267 = vst [vmem:[%s1353_s3 + $0x10] sm:$0xff] %v659_v57  ;;  %v359_v61 = vadd.f32 %v358_v59, %v1168_v8 }
  0xda   :  { %562 = vst [vmem:[%s1353_s3 + $0xc0] sm:$0xff] %v661_v60  ;;  %666 = vtanh.f32 %v221_v58  ;;  %v402_v62 = vpop.f32.mrf.mxu0 }
  0xdb   :  { %v663_v0 = vpop.eup %662  ;;  %668 = vtanh.f32 %v359_v61  ;;  %v403_v1 = vadd.f32 %v402_v62, %v1163_v6  ;;  %v443_v2 = vpop.f32.mrf.mxu1 }
  0xdc   :  { %v665_v3 = vpop.eup %664  ;;  %566 = vst [vmem:[%s1353_s3 + $0xe0] sm:$0xff] %v663_v0  ;;  %v444_v4 = vadd.f32 %v443_v2, %v1163_v6 }
  0xdd   :  { %567 = vst [vmem:[%s1353_s3 + $0xe8] sm:$0xff] %v665_v3  ;;  %670 = vtanh.f32 %v403_v1 }
  0xde   :  { %672 = vtanh.f32 %v444_v4 }
  0xdf   :  { %v223_v5 = vpop.f32.mrf.mxu2 }
  0xe0   :  { %v667_v7 = vpop.eup %666  ;;  %v224_v8 = vadd.f32 %v223_v5, %v1163_v6  ;;  %v361_v9 = vpop.f32.mrf.mxu3 }
  0xe1   :  { %v669_v10 = vpop.eup %668  ;;  %270 = vst [vmem:[%s1353_s3 + $0x28] sm:$0xff] %v667_v7  ;;  %v362_v11 = vadd.f32 %v361_v9, %v1163_v6 }
  0xe2   :  { %565 = vst [vmem:[%s1353_s3 + $0xd8] sm:$0xff] %v669_v10  ;;  %674 = vtanh.f32 %v224_v8  ;;  %v405_v12 = vpop.f32.mrf.mxu0 }
  0xe3   :  { %v671_v13 = vpop.eup %670  ;;  %676 = vtanh.f32 %v362_v11  ;;  %v406_v14 = vadd.f32 %v405_v12, %v1183_v20  ;;  %v446_v15 = vpop.f32.mrf.mxu1 }
  0xe4   :  { %v673_v16 = vpop.eup %672  ;;  %569 = vst [vmem:[%s1353_s3 + $0xf8] sm:$0xff] %v671_v13  ;;  %v447_v17 = vadd.f32 %v446_v15, %v1183_v20 }
  0xe5   :  { %570 = vst [vmem:[%s1353_s3 + $0x100] sm:$0xff] %v673_v16  ;;  %678 = vtanh.f32 %v406_v14 }
  0xe6   :  { %680 = vtanh.f32 %v447_v17 }
  0xe7   :  { %v226_v6 = vpop.f32.mrf.mxu2 }
  0xe8   :  { %v675_v18 = vpop.eup %674  ;;  %v227_v19 = vadd.f32 %v226_v6, %v1183_v20  ;;  %v364_v21 = vpop.f32.mrf.mxu3 }
  0xe9   :  { %v677_v22 = vpop.eup %676  ;;  %273 = vst [vmem:[%s1353_s3 + $0x40] sm:$0xff] %v675_v18  ;;  %v365_v24 = vadd.f32 %v364_v21, %v1183_v20 }
  0xea   :  { %568 = vst [vmem:[%s1353_s3 + $0xf0] sm:$0xff] %v677_v22  ;;  %682 = vtanh.f32 %v227_v19  ;;  %v408_v25 = vpop.f32.mrf.mxu0 }
  0xeb   :  { %v679_v26 = vpop.eup %678  ;;  %684 = vtanh.f32 %v365_v24  ;;  %v409_v27 = vadd.f32 %v408_v25, %v1142_v53  ;;  %v449_v28 = vpop.f32.mrf.mxu1 }
  0xec   :  { %v681_v29 = vpop.eup %680  ;;  %572 = vst [vmem:[%s1353_s3 + $0x110] sm:$0xff] %v679_v26  ;;  %v450_v30 = vadd.f32 %v449_v28, %v1142_v53 }
  0xed   :  { %573 = vst [vmem:[%s1353_s3 + $0x118] sm:$0xff] %v681_v29  ;;  %686 = vtanh.f32 %v409_v27 }
  0xee   :  { %688 = vtanh.f32 %v450_v30 }
  0xef   :  { %v229_v20 = vpop.f32.mrf.mxu2 }
  0xf0   :  { %v683_v31 = vpop.eup %682  ;;  %v230_v35 = vadd.f32 %v229_v20, %v1142_v53  ;;  %v367_v36 = vpop.f32.mrf.mxu3 }
  0xf1   :  { %v685_v37 = vpop.eup %684  ;;  %276 = vst [vmem:[%s1353_s3 + $0x58] sm:$0xff] %v683_v31  ;;  %v368_v38 = vadd.f32 %v367_v36, %v1142_v53 }
  0xf2   :  { %571 = vst [vmem:[%s1353_s3 + $0x108] sm:$0xff] %v685_v37  ;;  %690 = vtanh.f32 %v230_v35  ;;  %v411_v39 = vpop.f32.mrf.mxu0 }
  0xf3   :  { %v687_v40 = vpop.eup %686  ;;  %692 = vtanh.f32 %v368_v38  ;;  %v412_v41 = vadd.f32 %v411_v39, %v1150_v63  ;;  %v452_v42 = vpop.f32.mrf.mxu1 }
  0xf4   :  { %v689_v43 = vpop.eup %688  ;;  %575 = vst [vmem:[%s1353_s3 + $0x128] sm:$0xff] %v687_v40  ;;  %v453_v44 = vadd.f32 %v452_v42, %v1150_v63 }
  0xf5   :  { %576 = vst [vmem:[%s1353_s3 + $0x130] sm:$0xff] %v689_v43  ;;  %694 = vtanh.f32 %v412_v41 }
  0xf6   :  { %696 = vtanh.f32 %v453_v44 }
  0xf7   :  { %v232_v53 = vpop.f32.mrf.mxu2 }
  0xf8   :  { %v691_v45 = vpop.eup %690  ;;  %v233_v46 = vadd.f32 %v232_v53, %v1150_v63  ;;  %v370_v47 = vpop.f32.mrf.mxu3 }
  0xf9   :  { %v693_v48 = vpop.eup %692  ;;  %279 = vst [vmem:[%s1353_s3 + $0x70] sm:$0xff] %v691_v45  ;;  %v371_v49 = vadd.f32 %v370_v47, %v1150_v63 }
  0xfa   :  { %574 = vst [vmem:[%s1353_s3 + $0x120] sm:$0xff] %v693_v48  ;;  %698 = vtanh.f32 %v233_v46  ;;  %v414_v52 = vpop.f32.mrf.mxu0 }
  0xfb   :  { %v695_v32 = vpop.eup %694  ;;  %700 = vtanh.f32 %v371_v49  ;;  %v415_v33 = vadd.f32 %v414_v52, %v1188_v23  ;;  %v455_v50 = vpop.f32.mrf.mxu1 }
  0xfc   :  { %v697_v51 = vpop.eup %696  ;;  %578 = vst [vmem:[%s1353_s3 + $0x140] sm:$0xff] %v695_v32  ;;  %v456_v55 = vadd.f32 %v455_v50, %v1188_v23 }
  0xfd   :  { %579 = vst [vmem:[%s1353_s3 + $0x148] sm:$0xff] %v697_v51  ;;  %702 = vtanh.f32 %v415_v33 }
  0xfe   :  { %704 = vtanh.f32 %v456_v55 }
  0xff   :  { %v235_v63 = vpop.f32.mrf.mxu2 }
 0x100   :  { %v699_v54 = vpop.eup %698  ;;  %v236_v56 = vadd.f32 %v235_v63, %v1188_v23  ;;  %v373_v57 = vpop.f32.mrf.mxu3 }
 0x101   :  { %v701_v58 = vpop.eup %700  ;;  %282 = vst [vmem:[%s1353_s3 + $0x88] sm:$0xff] %v699_v54  ;;  %v374_v59 = vadd.f32 %v373_v57, %v1188_v23 }
 0x102   :  { %577 = vst [vmem:[%s1353_s3 + $0x138] sm:$0xff] %v701_v58  ;;  %706 = vtanh.f32 %v236_v56  ;;  %v417_v60 = vpop.f32.mrf.mxu0 }
 0x103   :  { %v703_v61 = vpop.eup %702  ;;  %708 = vtanh.f32 %v374_v59  ;;  %v418_v62 = vadd.f32 %v417_v60, %v1200_v34  ;;  %v458_v0 = vpop.f32.mrf.mxu1 }
 0x104   :  { %v705_v1 = vpop.eup %704  ;;  %581 = vst [vmem:[%s1353_s3 + $0x158] sm:$0xff] %v703_v61  ;;  %v459_v2 = vadd.f32 %v458_v0, %v1200_v34 }
 0x105   :  { %582 = vst [vmem:[%s1353_s3 + $0x160] sm:$0xff] %v705_v1  ;;  %710 = vtanh.f32 %v418_v62 }
 0x106   :  { %712 = vtanh.f32 %v459_v2 }
 0x107   :  { %v238_v23 = vpop.f32.mrf.mxu2 }
 0x108   :  { %v707_v3 = vpop.eup %706  ;;  %v239_v4 = vadd.f32 %v238_v23, %v1200_v34  ;;  %v376_v5 = vpop.f32.mrf.mxu3 }
 0x109   :  { %v709_v7 = vpop.eup %708  ;;  %285 = vst [vmem:[%s1353_s3 + $0xa0] sm:$0xff] %v707_v3  ;;  %v377_v8 = vadd.f32 %v376_v5, %v1200_v34 }
 0x10a   :  { %580 = vst [vmem:[%s1353_s3 + $0x150] sm:$0xff] %v709_v7  ;;  %714 = vtanh.f32 %v239_v4 }
 0x10b   :  { %v711_v9 = vpop.eup %710  ;;  %716 = vtanh.f32 %v377_v8 }
 0x10c   :  { %v713_v10 = vpop.eup %712  ;;  %584 = vst [vmem:[%s1353_s3 + $0x170] sm:$0xff] %v711_v9 }
 0x10d   :  { %585 = vst [vmem:[%s1353_s3 + $0x178] sm:$0xff] %v713_v10 }
 0x110   :  { %v715_v11 = vpop.eup %714 }
 0x111   :  { %v717_v12 = vpop.eup %716  ;;  %288 = vst [vmem:[%s1353_s3 + $0xb8] sm:$0xff] %v715_v11 }
 0x112   :  { %583 = vst [vmem:[%s1353_s3 + $0x168] sm:$0xff] %v717_v12 }

</bundles_post_ra>
